<compile_context>
chip_gen: v7x
topology: tpu7x:2x2x1
jax: 0.10.0
libtpu: 0.0.40
codegen_flags: <defaults>
</compile_context>

<pallas_src>
import math

import jax
import jax.numpy as jnp
from jax.experimental import pallas as pl
from jax.experimental.pallas import tpu as pltpu


OUT_PAD = 128  # lane-dense output slab width (q1 -> lane 0, q2 -> lane 1).


def _round_up(x, m):
    return ((x + m - 1) // m) * m


# --------------------------------------------------------------------------- #
# Kernel: 3 lane-dense fused layers, biases carried by a constant-1 lane.      #
# --------------------------------------------------------------------------- #
def _make_kernel(s1, s2, a_dim):
    """Build the kernel specialised on the (static) row split of layer 1."""
    r1, r2, in_dim = s1, s1 + s2, s1 + s2 + a_dim

    def kernel(s_ref, p_ref, a_ref, w14_ref, w25_ref, w36_ref, out_ref):
        # ---- Layer 1: fc_1 | fc_4 fused.  The first matmul is split over the
        # three raw inputs (no wrapper concat); the bias row is broadcast-added
        # and also plants 1.0 in the carry lane (survives ReLU).
        h = jnp.dot(s_ref[...], w14_ref[:r1, :],
                    preferred_element_type=jnp.float32)
        h = h + jnp.dot(p_ref[...], w14_ref[r1:r2, :],
                        preferred_element_type=jnp.float32)
        h = h + jnp.dot(a_ref[...], w14_ref[r2:in_dim, :],
                        preferred_element_type=jnp.float32)
        h = h + w14_ref[in_dim:in_dim + 1, :]      # bias row (+ carry-1 lane)
        h = jnp.maximum(h, 0.0)
        # ---- Layer 2: block-diag(fc_2, fc_5); b2/b5 folded into the carry row,
        # carry lane re-armed by a 1.0 diagonal entry.
        h = jnp.maximum(
            jnp.dot(h, w25_ref[...], preferred_element_type=jnp.float32), 0.0)
        # ---- Layer 3: fc_3 | fc_6 packed lane-dense; b3/b6 via the carry row.
        out_ref[...] = jnp.dot(
            h, w36_ref[...], preferred_element_type=jnp.float32
        ).astype(out_ref.dtype)

    return kernel


# --------------------------------------------------------------------------- #
# Wrapper                                                                     #
# --------------------------------------------------------------------------- #
def _pick_tb(batch):
    if batch <= 128:
        # Single grid step; splitting a tiny batch costs more (~0.35 us/step)
        # than it saves.
        return batch
    # >= 2 grid steps so the "parallel" batch axis shards across v7x's two
    # TensorCores; <=512-row tiles keep the pipeline near the HBM roofline and
    # stay far under VMEM limits (working set ~1 MB).
    return min(512, _round_up((batch + 1) // 2, 8))


@jax.jit
def mbq_forward(state, predict_state, action, packed):
    """Twin-Q forward. Returns (q1, q2), each (B, 1), matching the PyTorch module."""
    w14, w25, w36 = packed
    B = state.shape[0]
    s1, s2, a_dim = state.shape[-1], predict_state.shape[-1], action.shape[-1]
    in_rows, h_pad = w14.shape

    tb = _pick_tb(B)
    grid = (pl.cdiv(B, tb),)
    resident = lambda i: (0, 0)   # weights stay VMEM-resident across the grid

    out = pl.pallas_call(
        _make_kernel(s1, s2, a_dim),
        out_shape=jax.ShapeDtypeStruct((B, OUT_PAD), jnp.float32),
        grid_spec=pltpu.PrefetchScalarGridSpec(
            num_scalar_prefetch=0,
            grid=grid,
            in_specs=[
                pl.BlockSpec((tb, s1), lambda i: (i, 0)),
                pl.BlockSpec((tb, s2), lambda i: (i, 0)),
                pl.BlockSpec((tb, a_dim), lambda i: (i, 0)),
                pl.BlockSpec((in_rows, h_pad), resident),
                pl.BlockSpec(w25.shape, resident),
                pl.BlockSpec(w36.shape, resident),
            ],
            out_specs=pl.BlockSpec((tb, OUT_PAD), lambda i: (i, 0)),
        ),
        compiler_params=pltpu.CompilerParams(
            dimension_semantics=("parallel",),
        ),
    )(state, predict_state, action, w14, w25, w36)

    # One 2-lane slice, then two views of it (fewer wrapper-side XLA slices).
    q = out[:, :2]
    return q[:, :1], q[:, 1:]


# --------------------------------------------------------------------------- #
# Parameter init (torch nn.Linear-style, stored transposed for x @ W)         #
# --------------------------------------------------------------------------- #
def init_raw_params(key, state_dim_1, state_dim_2, action_dim, hidden_size):
    """Weights (in, out), biases (1, out); U(-1/sqrt(fan_in), 1/sqrt(fan_in))."""
    in_dim = state_dim_1 + state_dim_2 + action_dim
    dims = [
        (in_dim, hidden_size),       # fc_1
        (hidden_size, hidden_size),  # fc_2
        (hidden_size, 1),            # fc_3
        (in_dim, hidden_size),       # fc_4
        (hidden_size, hidden_size),  # fc_5
        (hidden_size, 1),            # fc_6
    ]
    keys = jax.random.split(key, 2 * len(dims))
    params = []
    for i, (fan_in, fan_out) in enumerate(dims):
        bound = 1.0 / math.sqrt(fan_in)
        w = jax.random.uniform(keys[2 * i], (fan_in, fan_out),
                               minval=-bound, maxval=bound, dtype=jnp.float32)
        b = jax.random.uniform(keys[2 * i + 1], (1, fan_out),
                               minval=-bound, maxval=bound, dtype=jnp.float32)
        params.append(w)
        params.append(b)
    return tuple(params)


def pack_params(raw, state_dim_1, state_dim_2, action_dim, hidden_size):
    """Fuse the twin heads into 3 packed arrays consumed by the kernel."""
    (w1, b1, w2, b2, w3, b3, w4, b4, w5, b5, w6, b6) = raw
    in_dim = state_dim_1 + state_dim_2 + action_dim
    H = hidden_size
    h_pad = _round_up(2 * H + 1, 128)   # fused hidden width + carry lane, lane-dense
    carry = 2 * H                       # column carrying the constant 1.0
    in_rows = _round_up(in_dim + 1, 8)  # +1 row for the layer-1 biases

    # Layer 1: [W1 | W4]; biases in row `in_dim`; carry lane armed with 1.0.
    w14 = jnp.zeros((in_rows, h_pad), jnp.float32)
    w14 = w14.at[:in_dim, :H].set(w1)
    w14 = w14.at[:in_dim, H:2 * H].set(w4)
    w14 = w14.at[in_dim, :H].set(b1[0])
    w14 = w14.at[in_dim, H:2 * H].set(b4[0])
    w14 = w14.at[in_dim, carry].set(1.0)

    # Layer 2: block-diag(W2, W5); b2/b5 in the carry row; carry re-armed.
    w25 = jnp.zeros((h_pad, h_pad), jnp.float32)
    w25 = w25.at[:H, :H].set(w2)
    w25 = w25.at[H:2 * H, H:2 * H].set(w5)
    w25 = w25.at[carry, :H].set(b2[0])
    w25 = w25.at[carry, H:2 * H].set(b5[0])
    w25 = w25.at[carry, carry].set(1.0)

    # Layer 3: both 1-wide heads packed lane-dense; b3/b6 in the carry row.
    w36 = jnp.zeros((h_pad, OUT_PAD), jnp.float32)
    w36 = w36.at[:H, 0].set(w3[:, 0])
    w36 = w36.at[H:2 * H, 1].set(w6[:, 0])
    w36 = w36.at[carry, 0].set(b3[0, 0])
    w36 = w36.at[carry, 1].set(b6[0, 0])

    return (w14, w25, w36)


def reference_forward(state, predict_state, action, raw):
    """Pure-JAX reference matching the PyTorch forward semantics (unpacked params)."""
    (w1, b1, w2, b2, w3, b3, w4, b4, w5, b5, w6, b6) = raw
    xu = jnp.concatenate((state, predict_state, action), axis=-1)
    x1 = jax.nn.relu(xu @ w1 + b1)
    x1 = jax.nn.relu(x1 @ w2 + b2)
    x1 = x1 @ w3 + b3
    x2 = jax.nn.relu(xu @ w4 + b4)
    x2 = jax.nn.relu(x2 @ w5 + b5)
    x2 = x2 @ w6 + b6
    return x1, x2


if __name__ == "__main__":
    # Small shapes consistent with the module's forward.
    batch = 8
    state_dim_1 = 8
    state_dim_2 = 8
    action_dim = 4
    hidden_size = 32

    key = jax.random.PRNGKey(0)
    k_params, k_s, k_ps, k_a = jax.random.split(key, 4)

    raw = init_raw_params(k_params, state_dim_1, state_dim_2, action_dim, hidden_size)
    packed = pack_params(raw, state_dim_1, state_dim_2, action_dim, hidden_size)

    state = jax.random.normal(k_s, (batch, state_dim_1), dtype=jnp.float32)
    predict_state = jax.random.normal(k_ps, (batch, state_dim_2), dtype=jnp.float32)
    action = jax.random.normal(k_a, (batch, action_dim), dtype=jnp.float32)

    q1, q2 = mbq_forward(state, predict_state, action, packed)
    jax.block_until_ready((q1, q2))

    # Correctness check against the pure-JAX reference (unpacked params).
    r1, r2 = reference_forward(state, predict_state, action, raw)
    assert q1.shape == (batch, 1) and q2.shape == (batch, 1)
    assert jnp.allclose(q1, r1, atol=1e-4, rtol=1e-4), float(jnp.max(jnp.abs(q1 - r1)))
    assert jnp.allclose(q2, r2, atol=1e-4, rtol=1e-4), float(jnp.max(jnp.abs(q2 - r2)))

    # Also exercise the multi-step grid / partial-last-block path (the v7x
    # 2-TensorCore sharding configuration): B=300 -> tb=152, 2 grid steps.
    big = 300
    kb = jax.random.split(jax.random.PRNGKey(1), 3)
    bstate = jax.random.normal(kb[0], (big, state_dim_1), dtype=jnp.float32)
    bpred = jax.random.normal(kb[1], (big, state_dim_2), dtype=jnp.float32)
    bact = jax.random.normal(kb[2], (big, action_dim), dtype=jnp.float32)
    bq1, bq2 = mbq_forward(bstate, bpred, bact, packed)
    jax.block_until_ready((bq1, bq2))
    br1, br2 = reference_forward(bstate, bpred, bact, raw)
    assert jnp.allclose(bq1, br1, atol=1e-4, rtol=1e-4), float(jnp.max(jnp.abs(bq1 - br1)))
    assert jnp.allclose(bq2, br2, atol=1e-4, rtol=1e-4), float(jnp.max(jnp.abs(bq2 - br2)))

    print("KERNEL_OK")
</pallas_src>

<mosaic_0001>
module attributes {stable_mosaic.version = 11 : i64} {
  func.func @kernel(%arg0: i32, %arg1: memref<8x8xf32, #tpu.memory_space<vmem>>, %arg2: memref<8x8xf32, #tpu.memory_space<vmem>>, %arg3: memref<8x4xf32, #tpu.memory_space<vmem>>, %arg4: memref<24x128xf32, #tpu.memory_space<vmem>>, %arg5: memref<128x128xf32, #tpu.memory_space<vmem>>, %arg6: memref<128x128xf32, #tpu.memory_space<vmem>>, %arg7: memref<8x128xf32, #tpu.memory_space<vmem>>) attributes {dimension_semantics = [#tpu.dimension_semantics<parallel>], iteration_bounds = array<i64: 1>, scalar_prefetch = 0 : i64, scratch_operands = 0 : i64, tpu.core_type = #tpu.core_type<tc>, window_params = [{transform_indices = @transform_0, window_bounds = array<i64: 8, 8>}, {transform_indices = @transform_1, window_bounds = array<i64: 8, 8>}, {transform_indices = @transform_2, window_bounds = array<i64: 8, 4>}, {pipeline_mode = #tpu.pipeline_mode<synchronous>, transform_indices = @transform_3, window_bounds = array<i64: 24, 128>}, {pipeline_mode = #tpu.pipeline_mode<synchronous>, transform_indices = @transform_4, window_bounds = array<i64: 128, 128>}, {pipeline_mode = #tpu.pipeline_mode<synchronous>, transform_indices = @transform_5, window_bounds = array<i64: 128, 128>}, {transform_indices = @transform_6, window_bounds = array<i64: 8, 128>}]} {
    %c0 = arith.constant 0 : index
    %c0_0 = arith.constant 0 : index
    %0 = vector.load %arg1[%c0, %c0_0] : memref<8x8xf32, #tpu.memory_space<vmem>>, vector<8x8xf32>
    %c0_1 = arith.constant 0 : index
    %c0_2 = arith.constant 0 : index
    %1 = vector.load %arg4[%c0_1, %c0_2] : memref<24x128xf32, #tpu.memory_space<vmem>>, vector<8x128xf32>
    %cst = arith.constant dense<0.000000e+00> : vector<8x128xf32>
    %2 = tpu.matmul %0, %1, %cst {dimension_numbers = #tpu.dot_dimension_numbers<[1], [0], [0], [1], [0, 0, 1, 1], [], []>} : vector<8x8xf32>, vector<8x128xf32>, vector<8x128xf32> -> vector<8x128xf32>
    %c0_3 = arith.constant 0 : index
    %c0_4 = arith.constant 0 : index
    %3 = vector.load %arg2[%c0_3, %c0_4] : memref<8x8xf32, #tpu.memory_space<vmem>>, vector<8x8xf32>
    %c8 = arith.constant 8 : index
    %c0_5 = arith.constant 0 : index
    %4 = vector.load %arg4[%c8, %c0_5] : memref<24x128xf32, #tpu.memory_space<vmem>>, vector<8x128xf32>
    %cst_6 = arith.constant dense<0.000000e+00> : vector<8x128xf32>
    %5 = tpu.matmul %3, %4, %cst_6 {dimension_numbers = #tpu.dot_dimension_numbers<[1], [0], [0], [1], [0, 0, 1, 1], [], []>} : vector<8x8xf32>, vector<8x128xf32>, vector<8x128xf32> -> vector<8x128xf32>
    %6 = arith.addf %2, %5 : vector<8x128xf32>
    %c0_7 = arith.constant 0 : index
    %c0_8 = arith.constant 0 : index
    %7 = vector.load %arg3[%c0_7, %c0_8] : memref<8x4xf32, #tpu.memory_space<vmem>>, vector<8x4xf32>
    %c16 = arith.constant 16 : index
    %c0_9 = arith.constant 0 : index
    %8 = vector.load %arg4[%c16, %c0_9] : memref<24x128xf32, #tpu.memory_space<vmem>>, vector<4x128xf32>
    %cst_10 = arith.constant dense<0.000000e+00> : vector<8x128xf32>
    %9 = tpu.matmul %7, %8, %cst_10 {dimension_numbers = #tpu.dot_dimension_numbers<[1], [0], [0], [1], [0, 0, 1, 1], [], []>} : vector<8x4xf32>, vector<4x128xf32>, vector<8x128xf32> -> vector<8x128xf32>
    %10 = arith.addf %6, %9 : vector<8x128xf32>
    %c20 = arith.constant 20 : index
    %c0_11 = arith.constant 0 : index
    %11 = vector.load %arg4[%c20, %c0_11] : memref<24x128xf32, #tpu.memory_space<vmem>>, vector<1x128xf32>
    %12 = vector.broadcast %11 : vector<1x128xf32> to vector<8x128xf32>
    %13 = arith.addf %10, %12 : vector<8x128xf32>
    %cst_12 = arith.constant 0.000000e+00 : f32
    %14 = vector.broadcast %cst_12 : f32 to vector<8x128xf32>
    %15 = arith.maximumf %13, %14 : vector<8x128xf32>
    %c0_13 = arith.constant 0 : index
    %c0_14 = arith.constant 0 : index
    %16 = vector.load %arg5[%c0_13, %c0_14] : memref<128x128xf32, #tpu.memory_space<vmem>>, vector<128x128xf32>
    %cst_15 = arith.constant dense<0.000000e+00> : vector<8x128xf32>
    %17 = tpu.matmul %15, %16, %cst_15 {dimension_numbers = #tpu.dot_dimension_numbers<[1], [0], [0], [1], [0, 0, 1, 1], [], []>} : vector<8x128xf32>, vector<128x128xf32>, vector<8x128xf32> -> vector<8x128xf32>
    %cst_16 = arith.constant 0.000000e+00 : f32
    %18 = vector.broadcast %cst_16 : f32 to vector<8x128xf32>
    %19 = arith.maximumf %17, %18 : vector<8x128xf32>
    %c0_17 = arith.constant 0 : index
    %c0_18 = arith.constant 0 : index
    %20 = vector.load %arg6[%c0_17, %c0_18] : memref<128x128xf32, #tpu.memory_space<vmem>>, vector<128x128xf32>
    %cst_19 = arith.constant dense<0.000000e+00> : vector<8x128xf32>
    %21 = tpu.matmul %19, %20, %cst_19 {dimension_numbers = #tpu.dot_dimension_numbers<[1], [0], [0], [1], [0, 0, 1, 1], [], []>} : vector<8x128xf32>, vector<128x128xf32>, vector<8x128xf32> -> vector<8x128xf32>
    %c0_20 = arith.constant 0 : index
    %c0_21 = arith.constant 0 : index
    %22 = vector.load %arg7[%c0_20, %c0_21] : memref<8x128xf32, #tpu.memory_space<vmem>>, vector<8x128xf32>
    tpu.vector_store %arg7[%c0_20, %c0_21], %21 {strides = array<i32>} : memref<8x128xf32, #tpu.memory_space<vmem>>, vector<8x128xf32>,
    return
  }
  func.func @transform_0(%arg0: i32) -> (i32, i32) {
    %c0_i32 = arith.constant 0 : i32
    %c0_i32_0 = arith.constant 0 : i32
    return %arg0, %c0_i32 : i32, i32
  }
  func.func @transform_1(%arg0: i32) -> (i32, i32) {
    %c0_i32 = arith.constant 0 : i32
    %c0_i32_0 = arith.constant 0 : i32
    return %arg0, %c0_i32 : i32, i32
  }
  func.func @transform_2(%arg0: i32) -> (i32, i32) {
    %c0_i32 = arith.constant 0 : i32
    %c0_i32_0 = arith.constant 0 : i32
    return %arg0, %c0_i32 : i32, i32
  }
  func.func @transform_3(%arg0: i32) -> (i32, i32) {
    %c0_i32 = arith.constant 0 : i32
    %c0_i32_0 = arith.constant 0 : i32
    %c0_i32_1 = arith.constant 0 : i32
    return %c0_i32, %c0_i32_0 : i32, i32
  }
  func.func @transform_4(%arg0: i32) -> (i32, i32) {
    %c0_i32 = arith.constant 0 : i32
    %c0_i32_0 = arith.constant 0 : i32
    %c0_i32_1 = arith.constant 0 : i32
    return %c0_i32, %c0_i32_0 : i32, i32
  }
  func.func @transform_5(%arg0: i32) -> (i32, i32) {
    %c0_i32 = arith.constant 0 : i32
    %c0_i32_0 = arith.constant 0 : i32
    %c0_i32_1 = arith.constant 0 : i32
    return %c0_i32, %c0_i32_0 : i32, i32
  }
  func.func @transform_6(%arg0: i32) -> (i32, i32) {
    %c0_i32 = arith.constant 0 : i32
    %c0_i32_0 = arith.constant 0 : i32
    return %arg0, %c0_i32 : i32, i32
  }
}

</mosaic_0001>

<bundles_post_ra>
// kernel: mbq_forward.1
= control target key start
LH: loop header
LB: loop body
LE: loop exit
PB: predicated region body
PF: predicated region fallthrough
CT: control target
= control target key end

     0   :  { %11 = vsyncpa [#allocation3], 0  ;;  %s908_s0 = inlined_call_operand.vmem [shape: f32[8,8], index: 0, kind: input, shape index: {}]   ;;  %s909_s1 = inlined_call_operand.hbm [shape: f32[8,8], index: 1, kind: input, shape index: {}]   ;;  %s910_s2 = inlined_call_operand.vmem [shape: f32[8,4], index: 2, kind: input, shape index: {}]   ;;  %s911_s3 = inlined_call_operand.hbm [shape: f32[24,128], index: 3, kind: input, shape index: {}]   ;;  %s912_s4 = inlined_call_operand.hbm [shape: f32[128,128], index: 4, kind: input, shape index: {}]   ;;  %s913_s5 = inlined_call_operand.hbm [shape: f32[128,128], index: 5, kind: input, shape index: {}]   ;;  %s914_s6 = inlined_call_operand.vmem [shape: f32[8,128], index: 6, kind: output, shape index: {}]  }
   0x1   :  { %12 = vsyncpa [#allocation5], 0 }
   0x2   :  { %13 = vsyncpa [#allocation8], 0  ;;  %s777_s21 = smov [#allocation4]   ;;  %s683_s25 = scalar_lea.hbm %s911_s3, 384 }
   0x3   :  { %s33_s22 = sshll.u32 %s777_s21, 4  ;;  %p684_p0 = scmp.ne.s32.totalorder %s911_s3, %s683_s25  ;;  %s34_s22 = int_to_ptr.vmem [resolvable:$true] %s33_s22 }
   0x4   :  { %p687_p1 = scmp.lt.u32.totalorder %s683_s25, %s911_s3 }
   0x6   :  { %p689_p2 = pnand %p687_p1, %p684_p0 }
   0x8   :  { %692 = shalt.err (!%p689_p2)
}
   0x9   :  { %s693_s30 = scalar_lea.vmem %s34_s22, 384  ;;  %p698_p4 = scmp.lt.s32.totalorder %s34_s22, %s34_s22 }
   0xa   :  { %p694_p3 = scmp.ne.s32.totalorder %s34_s22, %s693_s30  ;;  %p699_p5 = scmp.lt.s32.totalorder %s693_s30, %s693_s30 }
   0xc   :  { %p700_p6 = por %p699_p5, %p698_p4 }
   0xe   :  { %p701_p7 = pnand %p700_p6, %p694_p3 }
  0x10   :  { %704 = shalt.err (!%p701_p7)
}
  0x11   :  { %s778_s7 = smov 128   ;;  %s779_s8 = smov 8  }
  0x12   :  { %39 = dma.hbm_to_vmem [thread:$0]  %s911_s3, 384, %s34_s22, [#allocation5], %s778_s7, %s778_s7, %s779_s8  }
  0x13   :  { %s780_s11 = smov [#allocation2]   ;;  %s781_s13 = smov [#allocation6]  }
  0x14   :  { %s22_s12 = sshll.u32 %s780_s11, 4  ;;  %s45_s14 = sshll.u32 %s781_s13, 4  ;;  %s23_s12 = int_to_ptr.vmem [resolvable:$true] %s22_s12  ;;  %s46_s14 = int_to_ptr.vmem [resolvable:$true] %s45_s14 }
  0x15   :  { %s705_s17 = scalar_lea.hbm %s909_s1, 128 }
  0x16   :  { %p706_p8 = scmp.ne.s32.totalorder %s909_s1, %s705_s17  ;;  %p709_p9 = scmp.lt.u32.totalorder %s705_s17, %s909_s1 }
  0x18   :  { %p711_p10 = pnand %p709_p9, %p706_p8 }
  0x1a   :  { %714 = shalt.err (!%p711_p10)
}
  0x1b   :  { %s715_s3 = scalar_lea.vmem %s23_s12, 128  ;;  %p720_p12 = scmp.lt.s32.totalorder %s23_s12, %s23_s12 }
  0x1c   :  { %p716_p11 = scmp.ne.s32.totalorder %s23_s12, %s715_s3  ;;  %p721_p13 = scmp.lt.s32.totalorder %s715_s3, %s715_s3 }
  0x1e   :  { %p722_p0 = por %p721_p13, %p720_p12 }
  0x20   :  { %p723_p1 = pnand %p722_p0, %p716_p11 }
  0x22   :  { %726 = shalt.err (!%p723_p1)
}
  0x23   :  { %25 = dma.hbm_to_vmem [thread:$0]  %s909_s1, 128, %s23_s12, [#allocation3]  }
  0x24   :  { %s727_s26 = scalar_lea.hbm %s912_s4, 2048 }
  0x25   :  { %p728_p2 = scmp.ne.s32.totalorder %s912_s4, %s727_s26  ;;  %p731_p3 = scmp.lt.u32.totalorder %s727_s26, %s912_s4 }
  0x27   :  { %p733_p4 = pnand %p731_p3, %p728_p2 }
  0x29   :  { %736 = shalt.err (!%p733_p4)
}
  0x2a   :  { %s737_s9 = scalar_lea.vmem %s46_s14, 2048  ;;  %p742_p6 = scmp.lt.s32.totalorder %s46_s14, %s46_s14 }
  0x2b   :  { %p738_p5 = scmp.ne.s32.totalorder %s46_s14, %s737_s9  ;;  %p743_p7 = scmp.lt.s32.totalorder %s737_s9, %s737_s9 }
  0x2d   :  { %p744_p8 = por %p743_p7, %p742_p6 }
  0x2f   :  { %p745_p9 = pnand %p744_p8, %p738_p5 }
  0x31   :  { %748 = shalt.err (!%p745_p9)
}
  0x32   :  { %51 = dma.hbm_to_vmem [thread:$0]  %s912_s4, 2048, %s46_s14, [#allocation5], %s778_s7, %s778_s7, %s779_s8  }
  0x33   :  { %s782_s11 = smov [#allocation7]   ;;  %s749_s16 = scalar_lea.hbm %s913_s5, 2048 }
  0x34   :  { %s57_s12 = sshll.u32 %s782_s11, 4  ;;  %p750_p10 = scmp.ne.s32.totalorder %s913_s5, %s749_s16  ;;  %s58_s12 = int_to_ptr.vmem [resolvable:$true] %s57_s12 }
  0x35   :  { %p753_p11 = scmp.lt.u32.totalorder %s749_s16, %s913_s5 }
  0x37   :  { %p755_p12 = pnand %p753_p11, %p750_p10 }
  0x39   :  { %758 = shalt.err (!%p755_p12)
}
  0x3a   :  { %s759_s21 = scalar_lea.vmem %s58_s12, 2048  ;;  %p764_p0 = scmp.lt.s32.totalorder %s58_s12, %s58_s12 }
  0x3b   :  { %p760_p13 = scmp.ne.s32.totalorder %s58_s12, %s759_s21  ;;  %p765_p1 = scmp.lt.s32.totalorder %s759_s21, %s759_s21 }
  0x3d   :  { %p766_p2 = por %p765_p1, %p764_p0 }
  0x3f   :  { %p767_p3 = pnand %p766_p2, %p760_p13 }
  0x41   :  { %770 = shalt.err (!%p767_p3)
}
  0x42   :  { %63 = dma.hbm_to_vmem [thread:$0]  %s913_s5, 2048, %s58_s12, [#allocation8], %s778_s7, %s778_s7, %s779_s8  }
  0x43   :  { %771 = dma.done.wait [#allocation3], 128  }
  0x44   :  { %772 = vsyncadd [#allocation3], 4294967168 }
  0x45   :  { %773 = dma.done.wait [#allocation5], 2432  }
  0x46   :  { %774 = vsyncadd [#allocation5], 4294964864 }
  0x47   :  { %775 = dma.done.wait [#allocation8], 2048  }
  0x48   :  { %776 = vsyncadd [#allocation8], 4294965248  ;;  %v783_v0 = vmov 0.0   ;;  %vm784_vm0 = vmmov 0   ;;  %vm80_vm1 = vcmask 64512   ;;  %v79_v1 = vld [vmem:[#allocation4 + $0x8] sm:$0xff] }
  0x49   :  { %541 = vmatprep.subr.mxu0 %v783_v0  ;;  %543 = vmatprep.mubr.msk.f32.mxu0 %vm784_vm0, %v783_v0  ;;  %v78_v2 = vld [vmem:[#allocation2] sm:$0xff]  ;;  %v77_v3 = vld [vmem:[#allocation4] sm:$0xff]  ;;  %vm233_vm2 = vcmask 1043456   ;;  %v228_v5 = vld [vmem:[#allocation4 + $0x10] sm:$0xf]  ;;  %vm229_vm3 = vcmask 31744  }
  0x4a   :  { %546 = vmatprep.subr.mxu1 %v783_v0  ;;  %548 = vmatprep.mubr.msk.f32.mxu1 %vm784_vm0, %v783_v0  ;;  %v76_v4 = vld [vmem:[%s908_s0] sm:$0xff]  ;;  %v316_v7 = vld [vmem:[#allocation6 + $0x8] sm:$0xff]  ;;  %v317_v8 = vld [vmem:[#allocation6 + $0x10] sm:$0xff]  ;;  %v785_v12 = vmov 0.0|0.0  }
  0x4b   :  { %542 = vmatpush3.msra.mxu0 %v79_v1  ;;  %547 = vmatpush3.msra.mxu1 %v77_v3  ;;  %v315_v6 = vld [vmem:[#allocation6] sm:$0xff]  ;;  %v318_v11 = vld [vmem:[#allocation6 + $0x18] sm:$0xff]  ;;  %v320_v15 = vld [vmem:[#allocation6 + $0x28] sm:$0xff] }
  0x4c   :  { %544 = vmatmul.mubr.msk.f32.vlgmr.msra.gmra.mrb[0].mxu0 %vm80_vm1, %v78_v2  ;;  %551 = vmatprep.subr.mxu0 %v783_v0  ;;  %v227_v9 = vld [vmem:[%s910_s2] sm:$0xff]  ;;  %v627_v10 = vpack.c.bf16 %v316_v7, %v315_v6  ;;  %v630_v13 = vpack.c.bf16 %v318_v11, %v317_v8  ;;  %v321_v17 = vld [vmem:[#allocation6 + $0x30] sm:$0xff]  ;;  %v322_v18 = vld [vmem:[#allocation6 + $0x38] sm:$0xff] }
  0x4d   :  { %549 = vmatmul.mubr.msk.f32.vlgmr.msra.gmra.mrb[0].mxu1 %vm80_vm1, %v76_v4  ;;  %552 = vmatpush3.msk.msra.mxu0 %vm233_vm2, %v228_v5  ;;  %v319_v14 = vld [vmem:[#allocation6 + $0x20] sm:$0xff]  ;;  %v636_v19 = vpack.c.bf16 %v322_v18, %v321_v17  ;;  %v324_v21 = vld [vmem:[#allocation6 + $0x48] sm:$0xff]  ;;  %v325_v23 = vld [vmem:[#allocation6 + $0x50] sm:$0xff] }
  0x4e   :  { %553 = vmatprep.mubr.msk.f32.mxu0 %vm784_vm0, %v783_v0  ;;  %626 = vmatprep.subr.bf16.mxu1 %v785_v12  ;;  %v633_v16 = vpack.c.bf16 %v320_v15, %v319_v14  ;;  %v323_v20 = vld [vmem:[#allocation6 + $0x40] sm:$0xff]  ;;  %v326_v24 = vld [vmem:[#allocation6 + $0x58] sm:$0xff]  ;;  %v328_v27 = vld [vmem:[#allocation6 + $0x68] sm:$0xff] }
  0x4f   :  { %628 = vmatpush3.bf16.msra.mxu1 %v627_v10  ;;  %588 = vmatprep.mubr.msk.f32.mxu1 %vm784_vm0, %v783_v0  ;;  %v639_v22 = vpack.c.bf16 %v324_v21, %v323_v20  ;;  %v642_v25 = vpack.c.bf16 %v326_v24, %v325_v23  ;;  %v327_v26 = vld [vmem:[#allocation6 + $0x60] sm:$0xff]  ;;  %v329_v29 = vld [vmem:[#allocation6 + $0x70] sm:$0xff]  ;;  %v330_v30 = vld [vmem:[#allocation6 + $0x78] sm:$0xff] }
  0x50   :  { %554 = vmatmul.mubr.msk.f32.vlgmr.msra.gmra.mrb[2].mxu0 %vm229_vm3, %v227_v9  ;;  %629 = vmatprep.subr.bf16.mxu1 %v785_v12  ;;  %v645_v28 = vpack.c.bf16 %v328_v27, %v327_v26  ;;  %v648_v31 = vpack.c.bf16 %v330_v30, %v329_v29  ;;  %v402_v32 = vld [vmem:[#allocation7] sm:$0xff]  ;;  %v403_v33 = vld [vmem:[#allocation7 + $0x8] sm:$0xff]  ;;  %v404_v34 = vld [vmem:[#allocation7 + $0x10] sm:$0xff] }
  0x51   :  { %650 = vmatprep.subr.bf16.mxu0 %v785_v12  ;;  %623 = vmatprep.mubr.msk.f32.mxu0 %vm784_vm0, %v783_v0  ;;  %v651_v35 = vpack.c.bf16 %v403_v33, %v402_v32  ;;  %v405_v36 = vld [vmem:[#allocation7 + $0x18] sm:$0xff]  ;;  %v406_v38 = vld [vmem:[#allocation7 + $0x20] sm:$0xff]  ;;  %v407_v39 = vld [vmem:[#allocation7 + $0x28] sm:$0xff] }
  0x52   :  { %v654_v37 = vpack.c.bf16 %v405_v36, %v404_v34  ;;  %v657_v40 = vpack.c.bf16 %v407_v39, %v406_v38  ;;  %v408_v41 = vld [vmem:[#allocation7 + $0x30] sm:$0xff]  ;;  %v409_v42 = vld [vmem:[#allocation7 + $0x38] sm:$0xff]  ;;  %v410_v44 = vld [vmem:[#allocation7 + $0x40] sm:$0xff] }
  0x53   :  { %631 = vmatpush3.bf16.msra.mxu1 %v630_v13  ;;  %652 = vmatpush3.bf16.msra.mxu0 %v651_v35  ;;  %v660_v43 = vpack.c.bf16 %v409_v42, %v408_v41  ;;  %v411_v45 = vld [vmem:[#allocation7 + $0x48] sm:$0xff]  ;;  %v412_v47 = vld [vmem:[#allocation7 + $0x50] sm:$0xff]  ;;  %v413_v48 = vld [vmem:[#allocation7 + $0x58] sm:$0xff] }
  0x54   :  { %632 = vmatprep.subr.bf16.mxu1 %v785_v12  ;;  %653 = vmatprep.subr.bf16.mxu0 %v785_v12  ;;  %v663_v46 = vpack.c.bf16 %v411_v45, %v410_v44  ;;  %v666_v49 = vpack.c.bf16 %v413_v48, %v412_v47  ;;  %v414_v50 = vld [vmem:[#allocation7 + $0x60] sm:$0xff]  ;;  %v415_v51 = vld [vmem:[#allocation7 + $0x68] sm:$0xff]  ;;  %v500_v59 = vld [vmem:[#allocation4 + $0x14] ss:$0 sm:$0xff] }
  0x55   :  { %v669_v52 = vpack.c.bf16 %v415_v51, %v414_v50  ;;  %v416_v0 = vld [vmem:[#allocation7 + $0x70] sm:$0xff]  ;;  %v417_v1 = vld [vmem:[#allocation7 + $0x78] sm:$0xff] }
  0x56   :  { %v672_v2 = vpack.c.bf16 %v417_v1, %v416_v0 }
  0x57   :  { %634 = vmatpush3.bf16.msra.mxu1 %v633_v16  ;;  %655 = vmatpush3.bf16.msra.mxu0 %v654_v37 }
  0x58   :  { %635 = vmatprep.subr.bf16.mxu1 %v785_v12  ;;  %656 = vmatprep.subr.bf16.mxu0 %v785_v12 }
  0x5b   :  { %637 = vmatpush3.bf16.msra.mxu1 %v636_v19  ;;  %658 = vmatpush3.bf16.msra.mxu0 %v657_v40 }
  0x5c   :  { %638 = vmatprep.subr.bf16.mxu1 %v785_v12  ;;  %659 = vmatprep.subr.bf16.mxu0 %v785_v12 }
  0x5f   :  { %640 = vmatpush3.bf16.msra.mxu1 %v639_v22  ;;  %661 = vmatpush3.bf16.msra.mxu0 %v660_v43 }
  0x60   :  { %641 = vmatprep.subr.bf16.mxu1 %v785_v12  ;;  %662 = vmatprep.subr.bf16.mxu0 %v785_v12 }
  0x63   :  { %643 = vmatpush3.bf16.msra.mxu1 %v642_v25  ;;  %664 = vmatpush3.bf16.msra.mxu0 %v663_v46 }
  0x64   :  { %644 = vmatprep.subr.bf16.mxu1 %v785_v12  ;;  %665 = vmatprep.subr.bf16.mxu0 %v785_v12 }
  0x67   :  { %646 = vmatpush3.bf16.msra.mxu1 %v645_v28  ;;  %667 = vmatpush3.bf16.msra.mxu0 %v666_v49 }
  0x68   :  { %647 = vmatprep.subr.bf16.mxu1 %v785_v12  ;;  %668 = vmatprep.subr.bf16.mxu0 %v785_v12 }
  0x6b   :  { %649 = vmatpush3.bf16.msra.mxu1 %v648_v31  ;;  %670 = vmatpush3.bf16.msra.mxu0 %v669_v52 }
  0x6c   :  { %671 = vmatprep.subr.bf16.mxu0 %v785_v12 }
  0x6f   :  { %673 = vmatpush3.bf16.msra.mxu0 %v672_v2 }
 0x11f   :  { %v150_v53 = vpop.f32.mrb[0].mxu0 }
 0x120   :  { %v545_v54 = vpop.f32.mrb[1].mxu0  ;;  %v223_v55 = vpop.f32.mrb[0].mxu1 }
 0x121   :  { %v224_v56 = vadd.f32 %v223_v55, %v150_v53  ;;  %v550_v57 = vpop.f32.mrb[1].mxu1 }
 0x123   :  { %v303_v58 = vpop.f32.mrb[2].mxu0 }
 0x124   :  { %v307_v60 = vadd.f32 %v303_v58, %v224_v56  ;;  %v555_v61 = vpop.f32.mrb[3].mxu0 }
 0x126   :  { %v313_v62 = vadd.f32 %v500_v59, %v307_v60 }
 0x128   :  { %v314_v63 = vmax.f32 %v313_v62, 0.0 }
 0x12a   :  { %589 = vmatmul.mubr.f32.vlgmr.msra.gmra.mrb[2].mxu1 %v314_v63 }
 0x1fd   :  { %v397_v3 = vpop.f32.mrb[2].mxu1 }
 0x1fe   :  { %v401_v4 = vmax.f32 %v397_v3, 0.0  ;;  %v590_v5 = vpop.f32.mrb[3].mxu1 }
 0x200   :  { %624 = vmatmul.mubr.f32.vlgmr.msra.gmra.mrb[4].mxu0 %v401_v4 }
 0x2d3   :  { %v484_v6 = vpop.f32.mrb[4].mxu0 }
 0x2d4   :  { %488 = vst [vmem:[%s914_s6] sm:$0xff] %v484_v6  ;;  %v625_v7 = vpop.f32.mrb[5].mxu0 }
 0x2d5   :  { %493 = vsyncpa [#allocation3], 1 }
 0x2d6   :  { %494 = vsyncpa [#allocation5], 1 }
 0x2d7   :  { %495 = vsyncpa [#allocation8], 1 }

</bundles_post_ra>
